<compile_context>
chip_gen: v7x
topology: tpu7x:2x2x1
jax: 0.10.0
libtpu: 0.0.40
codegen_flags: <defaults>
</compile_context>

<pallas_src>
import jax
import jax.numpy as jnp
from jax import lax
from jax.experimental import pallas as pl
from jax.experimental.pallas import tpu as pltpu


def _patch_embed_kernel(x_ref, w_ref, b_ref, o_ref):
    # x: (tm, C), w: (E, C) -> contract on C (MXU, f32 accumulate), + bias.
    acc = lax.dot_general(
        x_ref[...], w_ref[...],
        dimension_numbers=(((1,), (1,)), ((), ())),
        preferred_element_type=jnp.float32,
    )
    o_ref[...] = (acc + b_ref[...]).astype(o_ref.dtype)


def _pick_tile(M, tm_max):
    """Largest 8-multiple tile <= tm_max that divides M; fall back gracefully."""
    if M <= tm_max:
        return M                      # single full-slab block (small-M path)
    t = (tm_max // 8) * 8
    while t >= 256:
        if M % t == 0:
            return t                  # even tiling, no ragged tail
        t -= 8
    return tm_max                     # ragged last tile; Pallas masks it


def patch_embed(x, weight, bias, *, tm_max=4096, use_core_parallel=False):
    """x: (B, H, C_in) f32; weight: (E, C_in); bias: (E,) -> (B, H, E)."""
    B, H, C = x.shape
    E = weight.shape[0]
    M = B * H

    x2 = x.reshape(M, C)              # contiguous reshape: free
    b = bias.reshape(1, E)            # contiguous reshape: free (no copy)

    tm = _pick_tile(M, tm_max)
    grid = (pl.cdiv(M, tm),)

    # On v7x set use_core_parallel=True (grid split across the 2 TensorCores);
    # plain "parallel" is a measured no-op on single-core gens but harmless.
    semantics = (pltpu.CORE_PARALLEL,) if use_core_parallel else ("parallel",)

    cost = pl.CostEstimate(
        flops=2 * M * C * E,
        transcendentals=0,
        bytes_accessed=4 * (M * C + C * E + E + M * E),
    )

    out = pl.pallas_call(
        _patch_embed_kernel,
        out_shape=jax.ShapeDtypeStruct((M, E), x.dtype),
        grid=grid,
        in_specs=[
            pl.BlockSpec((tm, C), lambda i: (i, 0)),   # streams through HBM
            pl.BlockSpec((E, C), lambda i: (0, 0)),    # VMEM-resident weight
            pl.BlockSpec((1, E), lambda i: (0, 0)),    # VMEM-resident bias
        ],
        out_specs=pl.BlockSpec((tm, E), lambda i: (i, 0)),
        compiler_params=pltpu.CompilerParams(dimension_semantics=semantics),
        cost_estimate=cost,
    )(x2, weight, b)

    return out.reshape(B, H, E)


if __name__ == "__main__":
    # Module defaults: in_chans=116, embed_dim=90, patch_size=1.
    B, H, C_in, E = 2, 16, 116, 90

    key = jax.random.PRNGKey(0)
    kx, kw, kb, kx2 = jax.random.split(key, 4)

    x = jax.random.normal(kx, (B, H, C_in), dtype=jnp.float32)

    # Deterministic synthetic parameters (Conv1d weight (E, C_in, 1) -> (E, C_in)).
    bound = 1.0 / (C_in ** 0.5)
    weight = jax.random.uniform(kw, (E, C_in), jnp.float32, -bound, bound)
    bias = jax.random.uniform(kb, (E,), jnp.float32, -bound, bound)

    # Small default shape: single-block path.
    out = patch_embed(x, weight, bias)
    out = jax.block_until_ready(out)
    ref = jnp.einsum("bhc,ec->bhe", x, weight) + bias[None, None, :]
    assert out.shape == (B, H, E)
    assert jnp.allclose(out, ref, atol=1e-4, rtol=1e-4)

    # Larger M exercises the tiled path: M = 4*3072 = 12288 -> 3 even 4096 tiles.
    B2, H2 = 4, 3072
    x_big = jax.random.normal(kx2, (B2, H2, C_in), dtype=jnp.float32)
    out_big = jax.block_until_ready(patch_embed(x_big, weight, bias))
    ref_big = jnp.einsum("bhc,ec->bhe", x_big, weight) + bias[None, None, :]
    assert out_big.shape == (B2, H2, E)
    assert jnp.allclose(out_big, ref_big, atol=1e-4, rtol=1e-4)

    # Ragged-tail path (M = 1200 with tm falling back) still correct.
    x_rag = jax.random.normal(kx2, (4, 300, C_in), dtype=jnp.float32)
    out_rag = jax.block_until_ready(patch_embed(x_rag, weight, bias, tm_max=512))
    ref_rag = jnp.einsum("bhc,ec->bhe", x_rag, weight) + bias[None, None, :]
    assert jnp.allclose(out_rag, ref_rag, atol=1e-4, rtol=1e-4)

    print("KERNEL_OK")
</pallas_src>

<mosaic_0001>
module attributes {stable_mosaic.version = 11 : i64} {
  func.func @_patch_embed_kernel(%arg0: i32, %arg1: memref<32x116xf32, #tpu.memory_space<vmem>>, %arg2: memref<90x116xf32, #tpu.memory_space<vmem>>, %arg3: memref<1x90xf32, #tpu.memory_space<vmem>>, %arg4: memref<32x90xf32, #tpu.memory_space<vmem>>) attributes {dimension_semantics = [#tpu.dimension_semantics<parallel>], iteration_bounds = array<i64: 1>, scalar_prefetch = 0 : i64, scratch_operands = 0 : i64, tpu.core_type = #tpu.core_type<tc>, window_params = [{transform_indices = @transform_0, window_bounds = array<i64: 32, 116>}, {pipeline_mode = #tpu.pipeline_mode<synchronous>, transform_indices = @transform_1, window_bounds = array<i64: 90, 116>}, {pipeline_mode = #tpu.pipeline_mode<synchronous>, transform_indices = @transform_2, window_bounds = array<i64: 1, 90>}, {transform_indices = @transform_3, window_bounds = array<i64: 32, 90>}]} {
    %c0 = arith.constant 0 : index
    %c0_0 = arith.constant 0 : index
    %0 = vector.load %arg1[%c0, %c0_0] : memref<32x116xf32, #tpu.memory_space<vmem>>, vector<32x116xf32>
    %c0_1 = arith.constant 0 : index
    %c0_2 = arith.constant 0 : index
    %1 = vector.load %arg2[%c0_1, %c0_2] : memref<90x116xf32, #tpu.memory_space<vmem>>, vector<90x116xf32>
    %cst = arith.constant dense<0.000000e+00> : vector<32x90xf32>
    %2 = tpu.matmul %0, %1, %cst {dimension_numbers = #tpu.dot_dimension_numbers<[1], [1], [0], [0], [0, 0, 1, 0], [], []>} : vector<32x116xf32>, vector<90x116xf32>, vector<32x90xf32> -> vector<32x90xf32>
    %c0_3 = arith.constant 0 : index
    %c0_4 = arith.constant 0 : index
    %3 = vector.load %arg3[%c0_3, %c0_4] : memref<1x90xf32, #tpu.memory_space<vmem>>, vector<1x90xf32>
    %4 = vector.broadcast %3 : vector<1x90xf32> to vector<32x90xf32>
    %5 = arith.addf %2, %4 : vector<32x90xf32>
    %c0_5 = arith.constant 0 : index
    %c0_6 = arith.constant 0 : index
    %6 = vector.load %arg4[%c0_5, %c0_6] : memref<32x90xf32, #tpu.memory_space<vmem>>, vector<32x90xf32>
    tpu.vector_store %arg4[%c0_5, %c0_6], %5 {strides = array<i32>} : memref<32x90xf32, #tpu.memory_space<vmem>>, vector<32x90xf32>,
    return
  }
  func.func @transform_0(%arg0: i32) -> (i32, i32) {
    %c0_i32 = arith.constant 0 : i32
    %c0_i32_0 = arith.constant 0 : i32
    return %arg0, %c0_i32 : i32, i32
  }
  func.func @transform_1(%arg0: i32) -> (i32, i32) {
    %c0_i32 = arith.constant 0 : i32
    %c0_i32_0 = arith.constant 0 : i32
    %c0_i32_1 = arith.constant 0 : i32
    return %c0_i32, %c0_i32_0 : i32, i32
  }
  func.func @transform_2(%arg0: i32) -> (i32, i32) {
    %c0_i32 = arith.constant 0 : i32
    %c0_i32_0 = arith.constant 0 : i32
    %c0_i32_1 = arith.constant 0 : i32
    return %c0_i32, %c0_i32_0 : i32, i32
  }
  func.func @transform_3(%arg0: i32) -> (i32, i32) {
    %c0_i32 = arith.constant 0 : i32
    %c0_i32_0 = arith.constant 0 : i32
    return %arg0, %c0_i32 : i32, i32
  }
}

</mosaic_0001>

<bundles_post_ra>
// kernel: tpu_custom_call.1
= control target key start
LH: loop header
LB: loop body
LE: loop exit
PB: predicated region body
PF: predicated region fallthrough
CT: control target
= control target key end

     0   :  { %8 = vsyncpa [#allocation3], 0  ;;  %s542_s0 = inlined_call_operand.hbm [shape: f32[32,116], index: 0, kind: input, shape index: {}]   ;;  %s543_s1 = inlined_call_operand.hbm [shape: f32[90,116], index: 1, kind: input, shape index: {}]   ;;  %s544_s2 = inlined_call_operand.vmem [shape: f32[1,90], index: 2, kind: input, shape index: {}]   ;;  %s545_s3 = inlined_call_operand.hbm [shape: f32[32,90], index: 3, kind: output, shape index: {}]  }
   0x1   :  { %9 = vsyncpa [#allocation6], 0 }
   0x2   :  { %10 = vsyncpa [#allocation4], 0  ;;  %s411_s12 = smov [#allocation2]   ;;  %s339_s16 = scalar_lea.hbm %s542_s0, 512 }
   0x3   :  { %s16_s13 = sshll.u32 %s411_s12, 4  ;;  %p340_p0 = scmp.ne.s32.totalorder %s542_s0, %s339_s16  ;;  %s17_s13 = int_to_ptr.vmem [resolvable:$true] %s16_s13 }
   0x4   :  { %p343_p1 = scmp.lt.u32.totalorder %s339_s16, %s542_s0 }
   0x6   :  { %p345_p2 = pnand %p343_p1, %p340_p0 }
   0x8   :  { %348 = shalt.err (!%p345_p2)
}
   0x9   :  { %s349_s21 = scalar_lea.vmem %s17_s13, 512  ;;  %p354_p4 = scmp.lt.s32.totalorder %s17_s13, %s17_s13 }
   0xa   :  { %p350_p3 = scmp.ne.s32.totalorder %s17_s13, %s349_s21  ;;  %p355_p5 = scmp.lt.s32.totalorder %s349_s21, %s349_s21 }
   0xc   :  { %p356_p6 = por %p355_p5, %p354_p4 }
   0xe   :  { %p357_p7 = pnand %p356_p6, %p350_p3 }
  0x10   :  { %360 = shalt.err (!%p357_p7)
}
  0x11   :  { %s412_s22 = smov 128   ;;  %s413_s23 = smov 8  }
  0x12   :  { %22 = dma.hbm_to_vmem [thread:$0]  %s542_s0, 512, %s17_s13, [#allocation3], %s412_s22, %s412_s22, %s413_s23  }
  0x13   :  { %s414_s26 = smov [#allocation5]   ;;  %s361_s30 = scalar_lea.hbm %s543_s1, 1536 }
  0x14   :  { %s28_s27 = sshll.u32 %s414_s26, 4  ;;  %p362_p8 = scmp.ne.s32.totalorder %s543_s1, %s361_s30  ;;  %s29_s27 = int_to_ptr.vmem [resolvable:$true] %s28_s27 }
  0x15   :  { %p365_p9 = scmp.lt.u32.totalorder %s361_s30, %s543_s1 }
  0x17   :  { %p367_p10 = pnand %p365_p9, %p362_p8 }
  0x19   :  { %370 = shalt.err (!%p367_p10)
}
  0x1a   :  { %s371_s8 = scalar_lea.vmem %s29_s27, 1536  ;;  %p376_p12 = scmp.lt.s32.totalorder %s29_s27, %s29_s27 }
  0x1b   :  { %p372_p11 = scmp.ne.s32.totalorder %s29_s27, %s371_s8  ;;  %p377_p13 = scmp.lt.s32.totalorder %s371_s8, %s371_s8 }
  0x1d   :  { %p378_p0 = por %p377_p13, %p376_p12 }
  0x1f   :  { %p379_p1 = pnand %p378_p0, %p372_p11 }
  0x21   :  { %382 = shalt.err (!%p379_p1)
}
  0x22   :  { %34 = dma.hbm_to_vmem [thread:$0]  %s543_s1, 1536, %s29_s27, [#allocation6], %s412_s22, %s412_s22, %s413_s23  }
  0x23   :  { %405 = dma.done.wait [#allocation3], 512  }
  0x24   :  { %406 = vsyncadd [#allocation3], 4294966784 }
  0x25   :  { %407 = dma.done.wait [#allocation6], 1536  }
  0x26   :  { %408 = vsyncadd [#allocation6], 4294965760  ;;  %vm66_vm0 = vcmask 949248   ;;  %v47_v1 = vld [vmem:[#allocation5] sm:$0xff]  ;;  %v48_v2 = vld [vmem:[#allocation5 + $0x8] sm:$0xff]  ;;  %s415_s11 = smov [#allocation7]  }
  0x27   :  { %vm468_vm1 = vmpackc.low %vm66_vm0, %vm66_vm0  ;;  %v49_v3 = vld [vmem:[#allocation5 + $0x10] sm:$0xff]  ;;  %v286_v4 = vpack.c.bf16 %v48_v2, %v47_v1  ;;  %v50_v5 = vld [vmem:[#allocation5 + $0x18] sm:$0xff]  ;;  %s210_s12 = sshll.u32 %s415_s11, 4  ;;  %vm200_vm2 = vcmask 736256   ;;  %s211_s12 = int_to_ptr.vmem [resolvable:$true] %s210_s12 }
  0x28   :  { %v292_v6 = vpack.c.bf16 %v50_v5, %v49_v3  ;;  %v43_v7 = vld [vmem:[#allocation2] sm:$0xff]  ;;  %v45_v8 = vld [vmem:[#allocation2 + $0x10] sm:$0xff]  ;;  %v52_v10 = vld [vmem:[#allocation5 + $0x28] sm:$0xff]  ;;  %s383_s13 = scalar_lea.vmem %s211_s12, 512  ;;  %p388_p3 = scmp.lt.s32.totalorder %s211_s12, %s211_s12 }
  0x29   :  { %288 = vmatprep.subr.msk.bf16.mxu0 %vm468_vm1, %v286_v4  ;;  %322 = vmatprep.subr.msk.bf16.mxu1 %vm468_vm1, %v286_v4  ;;  %v51_v9 = vld [vmem:[#allocation5 + $0x20] sm:$0xff]  ;;  %v53_v12 = vld [vmem:[#allocation5 + $0x30] sm:$0xff]  ;;  %v54_v13 = vld [vmem:[#allocation5 + $0x38] sm:$0xff]  ;;  %p384_p2 = scmp.ne.s32.totalorder %s211_s12, %s383_s13  ;;  %p389_p4 = scmp.lt.s32.totalorder %s383_s13, %s383_s13 }
  0x2a   :  { %291 = vmatpush3.bf16.xpose.msk.msra.mxu0 %vm468_vm1, %v286_v4  ;;  %328 = vmatpush3.bf16.xpose.msk.msra.mxu1 %vm468_vm1, %v286_v4  ;;  %v298_v11 = vpack.c.bf16 %v52_v10, %v51_v9  ;;  %v304_v14 = vpack.c.bf16 %v54_v13, %v53_v12  ;;  %v55_v15 = vld [vmem:[#allocation5 + $0x40] sm:$0xff]  ;;  %v56_v16 = vld [vmem:[#allocation5 + $0x48] sm:$0xff]  ;;  %v57_v18 = vld [vmem:[#allocation5 + $0x50] sm:$0xff] }
  0x2b   :  { %294 = vmatprep.subr.msk.bf16.mxu0 %vm468_vm1, %v292_v6  ;;  %323 = vmatprep.subr.msk.bf16.mxu1 %vm468_vm1, %v292_v6  ;;  %v310_v17 = vpack.c.bf16 %v56_v16, %v55_v15  ;;  %v58_v19 = vld [vmem:[#allocation5 + $0x58] sm:$0x3]  ;;  %v44_v21 = vld [vmem:[#allocation2 + $0x8] sm:$0xff]  ;;  %v223_v23 = vld [vmem:[%s544_s2] ss:$0 sm:$0xff]  ;;  %p390_p5 = por %p389_p4, %p388_p3 }
  0x2c   :  { %280 = vmatprep.mubr.msk.f32.mxu0 %vm66_vm0, %v43_v7  ;;  %283 = vmatprep.mubr.msk.f32.mxu1 %vm66_vm0, %v45_v8  ;;  %v316_v20 = vpack.c.bf16 %v58_v19, %v57_v18  ;;  %v46_v22 = vld [vmem:[#allocation2 + $0x18] sm:$0xff] }
  0x2d   :  { %p391_p6 = pnand %p390_p5, %p384_p2 }
  0x32   :  { %297 = vmatpush3.bf16.xpose.msk.msra.mxu0 %vm468_vm1, %v292_v6  ;;  %329 = vmatpush3.bf16.xpose.msk.msra.mxu1 %vm468_vm1, %v292_v6 }
  0x33   :  { %300 = vmatprep.subr.msk.bf16.mxu0 %vm468_vm1, %v298_v11  ;;  %324 = vmatprep.subr.msk.bf16.mxu1 %vm468_vm1, %v298_v11 }
  0x3a   :  { %303 = vmatpush3.bf16.xpose.msk.msra.mxu0 %vm468_vm1, %v298_v11  ;;  %330 = vmatpush3.bf16.xpose.msk.msra.mxu1 %vm468_vm1, %v298_v11 }
  0x3b   :  { %306 = vmatprep.subr.msk.bf16.mxu0 %vm468_vm1, %v304_v14  ;;  %325 = vmatprep.subr.msk.bf16.mxu1 %vm468_vm1, %v304_v14 }
  0x42   :  { %309 = vmatpush3.bf16.xpose.msk.msra.mxu0 %vm468_vm1, %v304_v14  ;;  %331 = vmatpush3.bf16.xpose.msk.msra.mxu1 %vm468_vm1, %v304_v14 }
  0x43   :  { %312 = vmatprep.subr.msk.bf16.mxu0 %vm468_vm1, %v310_v17  ;;  %326 = vmatprep.subr.msk.bf16.mxu1 %vm468_vm1, %v310_v17 }
  0x4a   :  { %315 = vmatpush3.bf16.xpose.msk.msra.mxu0 %vm468_vm1, %v310_v17  ;;  %332 = vmatpush3.bf16.xpose.msk.msra.mxu1 %vm468_vm1, %v310_v17 }
  0x4b   :  { %318 = vmatprep.subr.msk.bf16.mxu0 %vm468_vm1, %v316_v20  ;;  %327 = vmatprep.subr.msk.bf16.mxu1 %vm468_vm1, %v316_v20 }
  0x52   :  { %321 = vmatpush3.bf16.xpose.msk.msra.mxu0 %vm468_vm1, %v316_v20  ;;  %333 = vmatpush3.bf16.xpose.msk.msra.mxu1 %vm468_vm1, %v316_v20 }
  0x59   :  { %281 = vmatmul.mubr.msk.f32.vlgmr.msra.gmra.mrb[0].mxu0 %vm66_vm0, %v44_v21  ;;  %284 = vmatmul.mubr.msk.f32.vlgmr.msra.gmra.mrb[0].mxu1 %vm66_vm0, %v46_v22 }
 0x12c   :  { %v282_v24 = vpop.f32.mrb[0].mxu0  ;;  %v285_v25 = vpop.f32.mrb[0].mxu1 }
 0x12d   :  { %v187_v26 = vadd.f32 %v282_v24, %v223_v23  ;;  %v197_v27 = vadd.f32 %v285_v25, %v223_v23  ;;  %v181_v28 = vpop.f32.mrb[1].mxu0  ;;  %v191_v29 = vpop.f32.mrb[1].mxu1 }
 0x12e   :  { %v182_v30 = vadd.f32 %v223_v23, %v181_v28  ;;  %v192_v31 = vadd.f32 %v223_v23, %v191_v29 }
 0x12f   :  { %202 = vst.msk [vmem:[#allocation7 + $0x8] sm:$0xff] %vm200_vm2, %v187_v26  ;;  %204 = vst.msk [vmem:[#allocation7 + $0x18] sm:$0xff] %vm200_vm2, %v197_v27 }
 0x130   :  { %201 = vst.msk [vmem:[#allocation7] sm:$0xff] %vm200_vm2, %v182_v30  ;;  %203 = vst.msk [vmem:[#allocation7 + $0x10] sm:$0xff] %vm200_vm2, %v192_v31 }
 0x131   :  { %394 = shalt.err (!%p391_p6)
}
 0x132   :  { %s395_s15 = scalar_lea.hbm %s545_s3, 512 }
 0x133   :  { %p396_p7 = scmp.ne.s32.totalorder %s545_s3, %s395_s15  ;;  %p399_p8 = scmp.lt.u32.totalorder %s395_s15, %s545_s3 }
 0x135   :  { %p401_p9 = pnand %p399_p8, %p396_p7 }
 0x137   :  { %404 = shalt.err (!%p401_p9)
}
 0x138   :  { %216 = dma.vmem_to_hbm [thread:$0]  %s211_s12, 512, %s545_s3, [#allocation4], %s412_s22, %s412_s22, %s413_s23  }
 0x139   :  { %409 = dma.done.wait [#allocation4], 512  }
 0x13a   :  { %410 = vsyncadd [#allocation4], 4294966784 }
 0x13b   :  { %220 = vsyncpa [#allocation3], 1 }
 0x13c   :  { %221 = vsyncpa [#allocation6], 1 }
 0x13d   :  { %222 = vsyncpa [#allocation4], 1 }

</bundles_post_ra>
